<compile_context>
chip_gen: v5e
topology: v5e:2x2
jax: 0.10.0
libtpu: 0.0.40
codegen_flags: <defaults>
</compile_context>

<pallas_src>
import functools

import jax
import jax.numpy as jnp
from jax import lax
from jax.experimental import pallas as pl
from jax.experimental.pallas import tpu as pltpu


# ---------------------------------------------------------------------------
# Pallas kernel: fused MLP forward
#   h1    = sigmoid(x  @ W1  + b1)
#   h2    = sigmoid(h1 @ W2  + b2)
#   mu    =          h2 @ Wmu + bmu
#   sigma = exp(     h2 @ Ws  + bs )
# ---------------------------------------------------------------------------
def encoder_gaussian_kernel(
    x_ref,
    w1_ref, b1_ref,
    w2_ref, b2_ref,
    wmu_ref, bmu_ref,
    ws_ref, bs_ref,
    mu_ref, sigma_ref,
    *, valid_rows=None,
):
    x = x_ref[...]

    if valid_rows is not None:
        # Only compiled when the batch does not divide the tile: zero the
        # out-of-bounds rows of the final partial tile so garbage never flows
        # into exp() (the corresponding output rows are masked off anyway).
        tm = x.shape[0]
        row = lax.broadcasted_iota(jnp.int32, (tm, 1), 0) + pl.program_id(0) * tm
        x = jnp.where(row < valid_rows, x, 0.0)

    # hidden layer 1: Linear + Sigmoid (EUP logistic)
    z1 = jnp.dot(x, w1_ref[...], preferred_element_type=jnp.float32) + b1_ref[...]
    h1 = jax.nn.sigmoid(z1)

    # hidden layer 2: Linear + Sigmoid (EUP logistic)
    z2 = jnp.dot(h1, w2_ref[...], preferred_element_type=jnp.float32) + b2_ref[...]
    h2 = jax.nn.sigmoid(z2)

    # mu / sigma heads -> two direct outputs (no lane splitting, no wrapper slices)
    mu = jnp.dot(h2, wmu_ref[...], preferred_element_type=jnp.float32) + bmu_ref[...]
    sg = jnp.dot(h2, ws_ref[...], preferred_element_type=jnp.float32) + bs_ref[...]

    mu_ref[...] = mu.astype(mu_ref.dtype)
    sigma_ref[...] = jnp.exp(sg).astype(sigma_ref.dtype)


# ---------------------------------------------------------------------------
# One-time parameter prep (do NOT call per forward):
#   W -> W^T (in, out); bias -> (1, out).
# ---------------------------------------------------------------------------
def prepare_encoder_params(params):
    latent = int(params["wmu"].shape[0])
    prepped = dict(
        w1=params["w1"].T,
        b1=params["b1"].reshape(1, -1),
        w2=params["w2"].T,
        b2=params["b2"].reshape(1, -1),
        wmu=params["wmu"].T,
        bmu=params["bmu"].reshape(1, -1),
        ws=params["ws"].T,
        bs=params["bs"].reshape(1, -1),
    )
    return prepped, latent


# ---------------------------------------------------------------------------
# Tile selection: balanced tiles (waste <= 8 rows per tile), >= min_grid steps
# when the batch allows it (so both v7x TensorCores get work), multiples of the
# 8-row sublane tile.
# ---------------------------------------------------------------------------
def _cdiv(a, b):
    return -(-a // b)


def _round_up(a, m):
    return ((a + m - 1) // m) * m


def _pick_tile(b, tile_m, min_grid):
    if b <= 8:
        return b                       # single block equal to the full batch dim
    n = _cdiv(b, tile_m)
    n = max(n, min(min_grid, b // 8))  # ensure >=2 grid steps when b >= 16
    return _round_up(_cdiv(b, n), 8)


# ---------------------------------------------------------------------------
# Forward wrapper: batch-tiled grid, weights resident across grid steps,
# mu / sigma as two direct kernel outputs.
# ---------------------------------------------------------------------------
@functools.partial(jax.jit, static_argnames=("latent", "tile_m", "min_grid"))
def encoder_gaussian_forward(x, prepped, *, latent, tile_m=1024, min_grid=2):
    B, d_in = x.shape

    w1, b1 = prepped["w1"], prepped["b1"]
    w2, b2 = prepped["w2"], prepped["b2"]
    wmu, bmu = prepped["wmu"], prepped["bmu"]
    ws, bs = prepped["ws"], prepped["bs"]
    h1d = w1.shape[1]
    h2d = w2.shape[1]

    tm = _pick_tile(B, tile_m, min_grid)
    grid = (_cdiv(B, tm),)
    valid_rows = None if B % tm == 0 else B   # static; mask only when needed

    flops = 2 * B * (d_in * h1d + h1d * h2d + 2 * h2d * latent)
    transcendentals = B * (h1d + h2d + latent)
    bytes_accessed = 4 * (
        B * d_in
        + w1.size + b1.size + w2.size + b2.size
        + wmu.size + bmu.size + ws.size + bs.size
        + 2 * B * latent
    )

    kernel = functools.partial(encoder_gaussian_kernel, valid_rows=valid_rows)

    mu, sigma = pl.pallas_call(
        kernel,
        out_shape=(
            jax.ShapeDtypeStruct((B, latent), jnp.float32),
            jax.ShapeDtypeStruct((B, latent), jnp.float32),
        ),
        grid_spec=pltpu.PrefetchScalarGridSpec(
            num_scalar_prefetch=0,
            grid=grid,
            in_specs=[
                pl.BlockSpec((tm, d_in), lambda i: (i, 0)),   # x: tiled over batch
                pl.BlockSpec(w1.shape, lambda i: (0, 0)),     # weights/biases resident
                pl.BlockSpec(b1.shape, lambda i: (0, 0)),
                pl.BlockSpec(w2.shape, lambda i: (0, 0)),
                pl.BlockSpec(b2.shape, lambda i: (0, 0)),
                pl.BlockSpec(wmu.shape, lambda i: (0, 0)),
                pl.BlockSpec(bmu.shape, lambda i: (0, 0)),
                pl.BlockSpec(ws.shape, lambda i: (0, 0)),
                pl.BlockSpec(bs.shape, lambda i: (0, 0)),
            ],
            out_specs=[
                pl.BlockSpec((tm, latent), lambda i: (i, 0)),  # mu
                pl.BlockSpec((tm, latent), lambda i: (i, 0)),  # sigma
            ],
        ),
        compiler_params=pltpu.CompilerParams(
            dimension_semantics=("parallel",),
        ),
        cost_estimate=pl.CostEstimate(
            flops=flops,
            transcendentals=transcendentals,
            bytes_accessed=bytes_accessed,
        ),
    )(x, w1, b1, w2, b2, wmu, bmu, ws, bs)

    return mu, sigma


# ---------------------------------------------------------------------------
# Deterministic parameter init (PyTorch Linear shapes: W (out,in), b (out,))
# ---------------------------------------------------------------------------
def init_params(key, sizes):
    # sizes = [in, h1, h2, latent] -> two hidden Linear+Sigmoid layers + two heads
    ks = jax.random.split(key, 8)
    d_in, h1, h2, latent = sizes

    def lin(kw, kb, fan_in, fan_out):
        bound = 1.0 / jnp.sqrt(fan_in)
        w = jax.random.uniform(kw, (fan_out, fan_in), jnp.float32, -bound, bound)
        b = jax.random.uniform(kb, (fan_out,), jnp.float32, -bound, bound)
        return w, b

    w1, b1 = lin(ks[0], ks[1], d_in, h1)
    w2, b2 = lin(ks[2], ks[3], h1, h2)
    wmu, bmu = lin(ks[4], ks[5], h2, latent)
    ws, bs = lin(ks[6], ks[7], h2, latent)
    return dict(w1=w1, b1=b1, w2=w2, b2=b2, wmu=wmu, bmu=bmu, ws=ws, bs=bs)


def reference_forward(x, p):
    h1 = jax.nn.sigmoid(x @ p["w1"].T + p["b1"])
    h2 = jax.nn.sigmoid(h1 @ p["w2"].T + p["b2"])
    mu = h2 @ p["wmu"].T + p["bmu"]
    sigma = jnp.exp(h2 @ p["ws"].T + p["bs"])
    return mu, sigma


# TODO(synk): EncoderGaussian.kl_loss is a host-side training utility, not part of
# the forward pass; it is intentionally not implemented as a kernel here.

if __name__ == "__main__":
    key = jax.random.PRNGKey(0)
    k_x, k_p = jax.random.split(key)

    sizes = [32, 64, 48, 16]   # [input, hidden1, hidden2, latent]
    batch = 8

    x = jax.random.normal(k_x, (batch, sizes[0]), jnp.float32)
    params = init_params(k_p, sizes)

    # One-time weight prep (transpose + bias reshape), kept out of the hot path.
    prepped, latent = prepare_encoder_params(params)

    mu, sigma = encoder_gaussian_forward(x, prepped, latent=latent)
    jax.block_until_ready((mu, sigma))

    # Sanity check against pure-JAX reference (same math as the PyTorch module).
    mu_ref, sigma_ref = reference_forward(x, params)
    assert mu.shape == (batch, latent) and sigma.shape == (batch, latent)
    assert jnp.allclose(mu, mu_ref, atol=1e-5, rtol=1e-5)
    assert jnp.allclose(sigma, sigma_ref, atol=1e-5, rtol=1e-5)
    assert bool(jnp.all(sigma > 0))

    print("KERNEL_OK")
</pallas_src>

<mosaic_0001>
module attributes {stable_mosaic.version = 11 : i64} {
  func.func @encoder_gaussian_kernel(%arg0: i32, %arg1: memref<8x32xf32, #tpu.memory_space<vmem>>, %arg2: memref<32x64xf32, #tpu.memory_space<vmem>>, %arg3: memref<1x64xf32, #tpu.memory_space<vmem>>, %arg4: memref<64x48xf32, #tpu.memory_space<vmem>>, %arg5: memref<1x48xf32, #tpu.memory_space<vmem>>, %arg6: memref<48x16xf32, #tpu.memory_space<vmem>>, %arg7: memref<1x16xf32, #tpu.memory_space<vmem>>, %arg8: memref<48x16xf32, #tpu.memory_space<vmem>>, %arg9: memref<1x16xf32, #tpu.memory_space<vmem>>, %arg10: memref<8x16xf32, #tpu.memory_space<vmem>>, %arg11: memref<8x16xf32, #tpu.memory_space<vmem>>) attributes {dimension_semantics = [#tpu.dimension_semantics<parallel>], iteration_bounds = array<i64: 1>, scalar_prefetch = 0 : i64, scratch_operands = 0 : i64, tpu.core_type = #tpu.core_type<tc>, window_params = [{transform_indices = @transform_0, window_bounds = array<i64: 8, 32>}, {pipeline_mode = #tpu.pipeline_mode<synchronous>, transform_indices = @transform_1, window_bounds = array<i64: 32, 64>}, {pipeline_mode = #tpu.pipeline_mode<synchronous>, transform_indices = @transform_2, window_bounds = array<i64: 1, 64>}, {pipeline_mode = #tpu.pipeline_mode<synchronous>, transform_indices = @transform_3, window_bounds = array<i64: 64, 48>}, {pipeline_mode = #tpu.pipeline_mode<synchronous>, transform_indices = @transform_4, window_bounds = array<i64: 1, 48>}, {pipeline_mode = #tpu.pipeline_mode<synchronous>, transform_indices = @transform_5, window_bounds = array<i64: 48, 16>}, {pipeline_mode = #tpu.pipeline_mode<synchronous>, transform_indices = @transform_6, window_bounds = array<i64: 1, 16>}, {pipeline_mode = #tpu.pipeline_mode<synchronous>, transform_indices = @transform_7, window_bounds = array<i64: 48, 16>}, {pipeline_mode = #tpu.pipeline_mode<synchronous>, transform_indices = @transform_8, window_bounds = array<i64: 1, 16>}, {transform_indices = @transform_9, window_bounds = array<i64: 8, 16>}, {transform_indices = @transform_10, window_bounds = array<i64: 8, 16>}]} {
    %c0 = arith.constant 0 : index
    %c0_0 = arith.constant 0 : index
    %0 = vector.load %arg1[%c0, %c0_0] : memref<8x32xf32, #tpu.memory_space<vmem>>, vector<8x32xf32>
    %c0_1 = arith.constant 0 : index
    %c0_2 = arith.constant 0 : index
    %1 = vector.load %arg2[%c0_1, %c0_2] : memref<32x64xf32, #tpu.memory_space<vmem>>, vector<32x64xf32>
    %cst = arith.constant dense<0.000000e+00> : vector<8x64xf32>
    %2 = tpu.matmul %0, %1, %cst {dimension_numbers = #tpu.dot_dimension_numbers<[1], [0], [0], [1], [0, 0, 1, 1], [], []>} : vector<8x32xf32>, vector<32x64xf32>, vector<8x64xf32> -> vector<8x64xf32>
    %c0_3 = arith.constant 0 : index
    %c0_4 = arith.constant 0 : index
    %3 = vector.load %arg3[%c0_3, %c0_4] : memref<1x64xf32, #tpu.memory_space<vmem>>, vector<1x64xf32>
    %4 = vector.broadcast %3 : vector<1x64xf32> to vector<8x64xf32>
    %5 = arith.addf %2, %4 : vector<8x64xf32>
    %6 = arith.negf %5 : vector<8x64xf32>
    %7 = math.exp %6 : vector<8x64xf32>
    %cst_5 = arith.constant 1.000000e+00 : f32
    %8 = vector.broadcast %cst_5 : f32 to vector<8x64xf32>
    %9 = arith.addf %8, %7 : vector<8x64xf32>
    %10 = arith.divf %8, %9 : vector<8x64xf32>
    %c0_6 = arith.constant 0 : index
    %c0_7 = arith.constant 0 : index
    %11 = vector.load %arg4[%c0_6, %c0_7] : memref<64x48xf32, #tpu.memory_space<vmem>>, vector<64x48xf32>
    %cst_8 = arith.constant dense<0.000000e+00> : vector<8x48xf32>
    %12 = tpu.matmul %10, %11, %cst_8 {dimension_numbers = #tpu.dot_dimension_numbers<[1], [0], [0], [1], [0, 0, 1, 1], [], []>} : vector<8x64xf32>, vector<64x48xf32>, vector<8x48xf32> -> vector<8x48xf32>
    %c0_9 = arith.constant 0 : index
    %c0_10 = arith.constant 0 : index
    %13 = vector.load %arg5[%c0_9, %c0_10] : memref<1x48xf32, #tpu.memory_space<vmem>>, vector<1x48xf32>
    %14 = vector.broadcast %13 : vector<1x48xf32> to vector<8x48xf32>
    %15 = arith.addf %12, %14 : vector<8x48xf32>
    %16 = arith.negf %15 : vector<8x48xf32>
    %17 = math.exp %16 : vector<8x48xf32>
    %cst_11 = arith.constant 1.000000e+00 : f32
    %18 = vector.broadcast %cst_11 : f32 to vector<8x48xf32>
    %19 = arith.addf %18, %17 : vector<8x48xf32>
    %20 = arith.divf %18, %19 : vector<8x48xf32>
    %c0_12 = arith.constant 0 : index
    %c0_13 = arith.constant 0 : index
    %21 = vector.load %arg6[%c0_12, %c0_13] : memref<48x16xf32, #tpu.memory_space<vmem>>, vector<48x16xf32>
    %cst_14 = arith.constant dense<0.000000e+00> : vector<8x16xf32>
    %22 = tpu.matmul %20, %21, %cst_14 {dimension_numbers = #tpu.dot_dimension_numbers<[1], [0], [0], [1], [0, 0, 1, 1], [], []>} : vector<8x48xf32>, vector<48x16xf32>, vector<8x16xf32> -> vector<8x16xf32>
    %c0_15 = arith.constant 0 : index
    %c0_16 = arith.constant 0 : index
    %23 = vector.load %arg7[%c0_15, %c0_16] : memref<1x16xf32, #tpu.memory_space<vmem>>, vector<1x16xf32>
    %24 = vector.broadcast %23 : vector<1x16xf32> to vector<8x16xf32>
    %25 = arith.addf %22, %24 : vector<8x16xf32>
    %c0_17 = arith.constant 0 : index
    %c0_18 = arith.constant 0 : index
    %26 = vector.load %arg8[%c0_17, %c0_18] : memref<48x16xf32, #tpu.memory_space<vmem>>, vector<48x16xf32>
    %cst_19 = arith.constant dense<0.000000e+00> : vector<8x16xf32>
    %27 = tpu.matmul %20, %26, %cst_19 {dimension_numbers = #tpu.dot_dimension_numbers<[1], [0], [0], [1], [0, 0, 1, 1], [], []>} : vector<8x48xf32>, vector<48x16xf32>, vector<8x16xf32> -> vector<8x16xf32>
    %c0_20 = arith.constant 0 : index
    %c0_21 = arith.constant 0 : index
    %28 = vector.load %arg9[%c0_20, %c0_21] : memref<1x16xf32, #tpu.memory_space<vmem>>, vector<1x16xf32>
    %29 = vector.broadcast %28 : vector<1x16xf32> to vector<8x16xf32>
    %30 = arith.addf %27, %29 : vector<8x16xf32>
    %c0_22 = arith.constant 0 : index
    %c0_23 = arith.constant 0 : index
    %31 = vector.load %arg10[%c0_22, %c0_23] : memref<8x16xf32, #tpu.memory_space<vmem>>, vector<8x16xf32>
    tpu.vector_store %arg10[%c0_22, %c0_23], %25 {strides = array<i32>} : memref<8x16xf32, #tpu.memory_space<vmem>>, vector<8x16xf32>,
    %32 = math.exp %30 : vector<8x16xf32>
    %c0_24 = arith.constant 0 : index
    %c0_25 = arith.constant 0 : index
    %33 = vector.load %arg11[%c0_24, %c0_25] : memref<8x16xf32, #tpu.memory_space<vmem>>, vector<8x16xf32>
    tpu.vector_store %arg11[%c0_24, %c0_25], %32 {strides = array<i32>} : memref<8x16xf32, #tpu.memory_space<vmem>>, vector<8x16xf32>,
    return
  }
  func.func @transform_0(%arg0: i32) -> (i32, i32) {
    %c0_i32 = arith.constant 0 : i32
    %c0_i32_0 = arith.constant 0 : i32
    return %arg0, %c0_i32 : i32, i32
  }
  func.func @transform_1(%arg0: i32) -> (i32, i32) {
    %c0_i32 = arith.constant 0 : i32
    %c0_i32_0 = arith.constant 0 : i32
    %c0_i32_1 = arith.constant 0 : i32
    return %c0_i32, %c0_i32_0 : i32, i32
  }
  func.func @transform_2(%arg0: i32) -> (i32, i32) {
    %c0_i32 = arith.constant 0 : i32
    %c0_i32_0 = arith.constant 0 : i32
    %c0_i32_1 = arith.constant 0 : i32
    return %c0_i32, %c0_i32_0 : i32, i32
  }
  func.func @transform_3(%arg0: i32) -> (i32, i32) {
    %c0_i32 = arith.constant 0 : i32
    %c0_i32_0 = arith.constant 0 : i32
    %c0_i32_1 = arith.constant 0 : i32
    return %c0_i32, %c0_i32_0 : i32, i32
  }
  func.func @transform_4(%arg0: i32) -> (i32, i32) {
    %c0_i32 = arith.constant 0 : i32
    %c0_i32_0 = arith.constant 0 : i32
    %c0_i32_1 = arith.constant 0 : i32
    return %c0_i32, %c0_i32_0 : i32, i32
  }
  func.func @transform_5(%arg0: i32) -> (i32, i32) {
    %c0_i32 = arith.constant 0 : i32
    %c0_i32_0 = arith.constant 0 : i32
    %c0_i32_1 = arith.constant 0 : i32
    return %c0_i32, %c0_i32_0 : i32, i32
  }
  func.func @transform_6(%arg0: i32) -> (i32, i32) {
    %c0_i32 = arith.constant 0 : i32
    %c0_i32_0 = arith.constant 0 : i32
    %c0_i32_1 = arith.constant 0 : i32
    return %c0_i32, %c0_i32_0 : i32, i32
  }
  func.func @transform_7(%arg0: i32) -> (i32, i32) {
    %c0_i32 = arith.constant 0 : i32
    %c0_i32_0 = arith.constant 0 : i32
    %c0_i32_1 = arith.constant 0 : i32
    return %c0_i32, %c0_i32_0 : i32, i32
  }
  func.func @transform_8(%arg0: i32) -> (i32, i32) {
    %c0_i32 = arith.constant 0 : i32
    %c0_i32_0 = arith.constant 0 : i32
    %c0_i32_1 = arith.constant 0 : i32
    return %c0_i32, %c0_i32_0 : i32, i32
  }
  func.func @transform_9(%arg0: i32) -> (i32, i32) {
    %c0_i32 = arith.constant 0 : i32
    %c0_i32_0 = arith.constant 0 : i32
    return %arg0, %c0_i32 : i32, i32
  }
  func.func @transform_10(%arg0: i32) -> (i32, i32) {
    %c0_i32 = arith.constant 0 : i32
    %c0_i32_0 = arith.constant 0 : i32
    return %arg0, %c0_i32 : i32, i32
  }
}

</mosaic_0001>

<bundles_post_ra>
// kernel: encoder_gaussian_forward.1
= control target key start
LH: loop header
LB: loop body
LE: loop exit
PB: predicated region body
PF: predicated region fallthrough
CT: control target
= control target key end

     0   :  { %16 = vsyncpa [#allocation3], 0  ;;  %s468_s0 = inlined_call_operand.vmem [shape: f32[8,32], index: 0, kind: input, shape index: {}]   ;;  %s469_s1 = inlined_call_operand.vmem [shape: f32[32,64], index: 1, kind: input, shape index: {}]   ;;  %s470_s2 = inlined_call_operand.vmem [shape: f32[1,64], index: 2, kind: input, shape index: {}]   ;;  %s471_s3 = inlined_call_operand.vmem [shape: f32[64,48], index: 3, kind: input, shape index: {}]   ;;  %s472_s4 = inlined_call_operand.vmem [shape: f32[1,48], index: 4, kind: input, shape index: {}]   ;;  %s473_s5 = inlined_call_operand.vmem [shape: f32[48,16], index: 5, kind: input, shape index: {}]   ;;  %s474_s6 = inlined_call_operand.vmem [shape: f32[1,16], index: 6, kind: input, shape index: {}]   ;;  %s475_s7 = inlined_call_operand.vmem [shape: f32[48,16], index: 7, kind: input, shape index: {}]   ;;  %s476_s8 = inlined_call_operand.vmem [shape: f32[1,16], index: 8, kind: input, shape index: {}]   ;;  %s477_s9 = inlined_call_operand.hbm [shape: f32[8,16], index: 9, kind: output, shape index: {0}]   ;;  %s478_s10 = inlined_call_operand.hbm [shape: f32[8,16], index: 10, kind: output, shape index: {1}]  }
   0x1   :  { %v40_v0 = vld [vmem:[%s469_s1 + $0x18] sm:$0xff]  ;;  %v39_v1 = vld [vmem:[%s469_s1 + $0x10] sm:$0xff]  ;;  %v38_v2 = vld [vmem:[%s469_s1 + $0x8] sm:$0xff] }
   0x2   :  { %61 = vmatpush.msra.mxu0 %v40_v0 }
   0x4   :  { %62 = vmatpush.msra.mxu0 %v39_v1 }
   0x5   :  { %17 = vsyncpa [#allocation5], 0  ;;  %v37_v3 = vld [vmem:[%s469_s1] sm:$0xff]  ;;  %vm45_vm0 = vcmask 261120   ;;  %v95_v5 = vld [vmem:[%s471_s3 + $0x38] sm:$0xff]  ;;  %vm100_vm4 = vcmask 523264  }
   0x6   :  { %63 = vmatpush.msra.mxu0 %v38_v2  ;;  %v36_v4 = vld [vmem:[%s468_s0] sm:$0xff]  ;;  %v94_v6 = vld [vmem:[%s471_s3 + $0x30] sm:$0xff]  ;;  %112 = vmatpush.msra.mxu1 %v95_v5  ;;  %v93_v7 = vld [vmem:[%s471_s3 + $0x28] sm:$0xff]  ;;  %vm153_vm9 = vcmask 392192   ;;  %s318_s20 = smov [#allocation2]   ;;  %s219_s24 = sshll.u32 %s477_s9, 4  ;;  %s220_s24 = int_to_ptr.hbm [resolvable:$true] %s219_s24 }
   0x7   :  { %v92_v8 = vld [vmem:[%s471_s3 + $0x20] sm:$0xff]  ;;  %v91_v9 = vld [vmem:[%s471_s3 + $0x18] sm:$0xff]  ;;  %v90_v10 = vld [vmem:[%s471_s3 + $0x10] sm:$0xff]  ;;  %s217_s21 = sshll.u32 %s318_s20, 4  ;;  %vm207_vm11 = vcmask 130048   ;;  %s230_s27 = sshll.u32 %s478_s10, 4  ;;  %s218_s21 = int_to_ptr.vmem [resolvable:$true] %s217_s21  ;;  %s231_s27 = int_to_ptr.hbm [resolvable:$true] %s230_s27 }
   0x8   :  { %64 = vmatpush.msra.mxu0 %v37_v3  ;;  %113 = vmatpush.msra.mxu1 %v94_v6  ;;  %v89_v11 = vld [vmem:[%s471_s3 + $0x8] sm:$0xff]  ;;  %v88_v12 = vld [vmem:[%s471_s3] sm:$0xff]  ;;  %v146_v33 = vld [vmem:[%s473_s5 + $0x18] sm:$0xff] }
   0x9   :  { %244 = vmatmul.msk.f32.vlgmr.msra.gmra.mxu0 %vm45_vm0, %v36_v4  ;;  %v252_v13 = vld [vmem:[%s470_s2] ss:$0 sm:$0xff]  ;;  %v148_v29 = vld [vmem:[%s473_s5 + $0x28] sm:$0xff]  ;;  %v180_v34 = vld [vmem:[%s475_s7 + $0x18] sm:$0xff] }
   0xa   :  { %114 = vmatpush.msra.mxu1 %v93_v7  ;;  %v182_v30 = vld [vmem:[%s475_s7 + $0x28] sm:$0xff]  ;;  %v147_v31 = vld [vmem:[%s473_s5 + $0x20] sm:$0xff]  ;;  %167 = vmatpush.msra.mxu2 %v148_v29  ;;  %v145_v35 = vld [vmem:[%s473_s5 + $0x10] sm:$0xff] }
   0xb   :  { %197 = vmatpush.msra.mxu3 %v182_v30  ;;  %v181_v32 = vld [vmem:[%s475_s7 + $0x20] sm:$0xff]  ;;  %v179_v36 = vld [vmem:[%s475_s7 + $0x10] sm:$0xff]  ;;  %v144_v37 = vld [vmem:[%s473_s5 + $0x8] sm:$0xff] }
   0xc   :  { %115 = vmatpush.msra.mxu1 %v92_v8  ;;  %168 = vmatpush.msra.mxu2 %v147_v31  ;;  %v178_v38 = vld [vmem:[%s475_s7 + $0x8] sm:$0xff]  ;;  %v143_v39 = vld [vmem:[%s473_s5] sm:$0xff] }
   0xd   :  { %198 = vmatpush.msra.mxu3 %v181_v32  ;;  %v177_v40 = vld [vmem:[%s475_s7] sm:$0xff] }
   0xe   :  { %116 = vmatpush.msra.mxu1 %v91_v9  ;;  %169 = vmatpush.msra.mxu2 %v146_v33  ;;  %v253_v41 = vld [vmem:[%s472_s4] ss:$0 sm:$0xff] }
   0xf   :  { %199 = vmatpush.msra.mxu3 %v180_v34  ;;  %v254_v57 = vld [vmem:[%s474_s6] ss:$0 sm:$0xff]  ;;  %s319_s6 = smov [#allocation4]  }
  0x10   :  { %117 = vmatpush.msra.mxu1 %v90_v10  ;;  %170 = vmatpush.msra.mxu2 %v145_v35  ;;  %v255_v58 = vld [vmem:[%s476_s8] ss:$0 sm:$0xff]  ;;  %s228_s25 = sshll.u32 %s319_s6, 4  ;;  %s229_s25 = int_to_ptr.vmem [resolvable:$true] %s228_s25 }
  0x11   :  { %200 = vmatpush.msra.mxu3 %v179_v36 }
  0x12   :  { %118 = vmatpush.msra.mxu1 %v89_v11  ;;  %171 = vmatpush.msra.mxu2 %v144_v37 }
  0x13   :  { %201 = vmatpush.msra.mxu3 %v178_v38 }
  0x14   :  { %119 = vmatpush.msra.mxu1 %v88_v12  ;;  %172 = vmatpush.msra.mxu2 %v143_v39 }
  0x15   :  { %202 = vmatpush.msra.mxu3 %v177_v40 }
  0x86   :  { %v66_v14 = vpop.f32.mrf.mxu0 }
  0x87   :  { %v67_v15 = vadd.f32 %v252_v13, %v66_v14 }
  0x89   :  { %v245_v16 = vmul.f32 -1.442695, %v67_v15 }
  0x8b   :  { %256 = vpow2.f32 %v245_v16 }
  0x91   :  { %v257_v17 = vpop.eup %256 }
  0x92   :  { %v72_v18 = vadd.f32 1.0, %v257_v17 }
  0x94   :  { %258 = vrcp.f32 %v72_v18  ;;  %v84_v22 = vand.u32 2147483648, %v72_v18  ;;  %v82_v24 = vand.u32 2147483647, %v72_v18  ;;  %vm78_vm2 = vweird.f32 %v72_v18 }
  0x96   :  { %v85_v26 = vor.u32 1.1754944e-38, %v84_v22  ;;  %vm83_vm5 = vcmp.eq.f32.partialorder %v82_v24, 8.507059e+37 }
  0x9a   :  { %v259_v19 = vpop.eup %258 }
  0x9b   :  { %v74_v20 = vmul.f32 %v259_v19, %v72_v18  ;;  %vm79_vm1 = vweird.f32 %v259_v19 }
  0x9c   :  { %vm80_vm3 = vmor %vm78_vm2, %vm79_vm1 }
  0x9d   :  { %v75_v21 = vsub.f32 1.0, %v74_v20 }
  0x9f   :  { %v76_v23 = vmul.f32 %v259_v19, %v75_v21 }
  0xa1   :  { %v77_v25 = vadd.f32 %v259_v19, %v76_v23 }
  0xa3   :  { %v81_v27 = vsel %vm80_vm3, %v259_v19, %v77_v25 }
  0xa4   :  { %v86_v28 = vsel %vm83_vm5, %v85_v26, %v81_v27 }
  0xa5   :  { %246 = vmatmul.msk.f32.vlgmr.msra.gmra.mxu1 %vm100_vm4, %v86_v28 }
 0x122   :  { %v121_v42 = vpop.f32.mrf.mxu1 }
 0x123   :  { %v122_v43 = vadd.f32 %v253_v41, %v121_v42 }
 0x125   :  { %v247_v44 = vmul.f32 -1.442695, %v122_v43 }
 0x127   :  { %260 = vpow2.f32 %v247_v44 }
 0x12d   :  { %v261_v45 = vpop.eup %260 }
 0x12e   :  { %v127_v46 = vadd.f32 1.0, %v261_v45 }
 0x130   :  { %262 = vrcp.f32 %v127_v46  ;;  %v139_v50 = vand.u32 2147483648, %v127_v46  ;;  %v137_v52 = vand.u32 2147483647, %v127_v46  ;;  %vm133_vm7 = vweird.f32 %v127_v46 }
 0x132   :  { %v140_v54 = vor.u32 1.1754944e-38, %v139_v50  ;;  %vm138_vm10 = vcmp.eq.f32.partialorder %v137_v52, 8.507059e+37 }
 0x136   :  { %v263_v47 = vpop.eup %262 }
 0x137   :  { %v129_v48 = vmul.f32 %v263_v47, %v127_v46  ;;  %vm134_vm6 = vweird.f32 %v263_v47 }
 0x138   :  { %vm135_vm8 = vmor %vm133_vm7, %vm134_vm6 }
 0x139   :  { %v130_v49 = vsub.f32 1.0, %v129_v48 }
 0x13b   :  { %v131_v51 = vmul.f32 %v263_v47, %v130_v49 }
 0x13d   :  { %v132_v53 = vadd.f32 %v263_v47, %v131_v51 }
 0x13f   :  { %v136_v55 = vsel %vm135_vm8, %v263_v47, %v132_v53 }
 0x140   :  { %v141_v56 = vsel %vm138_vm10, %v140_v54, %v136_v55 }
 0x141   :  { %248 = vmatmul.msk.f32.vlgmr.msra.gmra.mxu2 %vm153_vm9, %v141_v56  ;;  %249 = vmatmul.msk.f32.vlgmr.msra.gmra.mxu3 %vm153_vm9, %v141_v56 }
 0x1c4   :  { %v174_v59 = vpop.f32.mrf.mxu2  ;;  %v204_v60 = vpop.f32.mrf.mxu3 }
 0x1c5   :  { %v175_v61 = vadd.f32 %v254_v57, %v174_v59  ;;  %v205_v62 = vadd.f32 %v255_v58, %v204_v60 }
 0x1c7   :  { %v209_v63 = vmul.f32 1.442695, %v205_v62  ;;  %208 = vst.msk [vmem:[#allocation2] sm:$0xff] %vm207_vm11, %v175_v61 }
 0x1c8   :  { %222 = dma.vmem_to_hbm [thread:$0]  %s218_s21, 128, %s220_s24, [#allocation3]  }
 0x1c9   :  { %264 = vpow2.f32 %v209_v63 }
 0x1cf   :  { %v265_v0 = vpop.eup %264 }
 0x1d0   :  { %211 = vst.msk [vmem:[#allocation4] sm:$0xff] %vm207_vm11, %v265_v0 }
 0x1d1   :  { %233 = dma.vmem_to_hbm [thread:$0]  %s229_s25, 128, %s231_s27, [#allocation5]  }
 0x1d2   :  { %314 = dma.done.wait [#allocation3], 128  }
 0x1d3   :  { %315 = vsyncadd [#allocation3], 4294967168 }
 0x1d4   :  { %316 = dma.done.wait [#allocation5], 128  }
 0x1d5   :  { %317 = vsyncadd [#allocation5], 4294967168 }
 0x1d6   :  { %242 = vsyncpa [#allocation3], 1 }
 0x1d7   :  { %243 = vsyncpa [#allocation5], 1 }

</bundles_post_ra>
